<compile_context>
chip_gen: v7x
topology: tpu7x:2x2x1
jax: 0.10.0
libtpu: 0.0.40
codegen_flags: <defaults>
</compile_context>

<pallas_src>
import functools

import jax
import jax.numpy as jnp
from jax.experimental import pallas as pl
from jax.experimental.pallas import tpu as pltpu

LANE = 128
SUBLANE = 8
NEG_INF = -1e30


def _cdiv(a, b):
    return (a + b - 1) // b


def _round_up(x, m):
    return ((x + m - 1) // m) * m


def actor_small_kernel(x_ref, w0_ref, w_ref, b_ref, out_ref, *,
                       n_layers, out_width):
    """Full forward pass on one (TB, F) batch tile.

    x_ref  : (TB, F)        f32 state features (true width, no lane padding)
    w0_ref : (F, P)         layer-0 weight, bf16, output cols zero-padded
    w_ref  : (L-1, P, P)    layers 1..L-1 weights, bf16, zero-padded
    b_ref  : (L, P)         f32 biases; last row carries -1e30 on padded
                            action lanes (mask folded in at pack time)
    out_ref: (TB, out_width) softmax probs (valid lanes [0, action_space_size))
    """
    w_dtype = w0_ref.dtype
    b_all = b_ref[...]                                   # (L, P) f32, tiny

    # Layer 0: narrow-K matmul straight from the un-padded input tile.
    h = jnp.dot(x_ref[...].astype(w_dtype), w0_ref[...],
                preferred_element_type=jnp.float32)
    h = jnp.maximum(h + b_all[0:1, :], 0.0)

    # Layers 1..L-1 (static unroll -> one MXU issue each).
    for i in range(1, n_layers):
        y = jnp.dot(h.astype(w_dtype), w_ref[i - 1],
                    preferred_element_type=jnp.float32)
        y = y + b_all[i:i + 1, :]
        h = jnp.maximum(y, 0.0) if i < n_layers - 1 else y

    # Padded action lanes already hold ~-1e30 via the folded bias, so their
    # exp underflows to exactly 0 — no iota/where mask needed.
    m = jnp.max(h, axis=-1, keepdims=True)
    e = jnp.exp(h - m)
    denom = jnp.sum(e, axis=-1, keepdims=True)
    probs = e / denom                     # exact divide: rows sum to 1
    out_ref[...] = probs[:, :out_width]   # narrow, contiguous HBM writeback


def actor_small_forward(x, w0_packed, w_rest_packed, b_packed,
                        action_space_size, *, block_b=1024):
    """x: [B, state_input_size] f32 -> probs: [B, action_space_size] f32."""
    B, F = x.shape
    Lm1, P, P2 = w_rest_packed.shape
    L = Lm1 + 1
    assert P == P2 and b_packed.shape == (L, P) and w0_packed.shape == (F, P)

    out_width = _round_up(max(action_space_size, 1), SUBLANE)   # actions -> 8

    # Balanced batch tiling: avoid padding B up to a full oversized tile, and
    # keep >= 2 grid steps when the batch is big enough so v7x's two
    # TensorCores both get work (grid axis is "parallel").
    num_tiles = _cdiv(B, block_b)
    if num_tiles == 1 and B >= 512:
        num_tiles = 2
    TB = _round_up(_cdiv(B, num_tiles), SUBLANE)
    Bp = num_tiles * TB

    # Only the batch axis is padded; feature width stays at its true size.
    x_p = x.astype(jnp.float32)
    if Bp != B:
        x_p = jnp.zeros((Bp, F), jnp.float32).at[:B].set(x_p)

    kernel = functools.partial(actor_small_kernel,
                               n_layers=L, out_width=out_width)

    probs_p = pl.pallas_call(
        kernel,
        out_shape=jax.ShapeDtypeStruct((Bp, out_width), jnp.float32),
        grid=(num_tiles,),
        in_specs=[
            pl.BlockSpec((TB, F), lambda i: (i, 0)),          # x: streamed
            pl.BlockSpec((F, P), lambda i: (0, 0)),           # w0: resident
            pl.BlockSpec((Lm1, P, P), lambda i: (0, 0, 0)),   # w1..4: resident
            pl.BlockSpec((L, P), lambda i: (0, 0)),           # biases: resident
        ],
        out_specs=pl.BlockSpec((TB, out_width), lambda i: (i, 0)),
        compiler_params=pltpu.CompilerParams(
            dimension_semantics=("parallel",)),               # dual-TC on v7x
    )(x_p, w0_packed, w_rest_packed, b_packed)

    return probs_p[:B, :action_space_size]


def init_params(key, state_input_size, action_space_size, hidden_size):
    """nn.Linear-style init; weights stored as [in_features, out_features]."""
    dims = [
        (state_input_size, hidden_size),   # fc1_a
        (hidden_size, hidden_size),        # fc2_a
        (hidden_size, hidden_size),        # fc3_a
        (hidden_size, hidden_size),        # fc4_a
        (hidden_size, action_space_size),  # fc6_a
    ]
    params = []
    for fan_in, fan_out in dims:
        key, kw, kb = jax.random.split(key, 3)
        bound = 1.0 / (fan_in ** 0.5)
        w = jax.random.uniform(kw, (fan_in, fan_out), jnp.float32, -bound, bound)
        b = jax.random.uniform(kb, (fan_out,), jnp.float32, -bound, bound)
        params.append((w, b))
    return params


def pack_params(params, action_space_size, *, compute_dtype=jnp.bfloat16):
    """Pack (w, b) per layer into: w0 (F,P), w_rest (L-1,P,P), biases (L,P).

    The padded-action-lane softmax mask is folded into the last layer's bias.
    """
    L = len(params)
    F = params[0][0].shape[0]
    max_dim = max(max(w.shape[1] for w, _ in params),
                  max(w.shape[0] for w, _ in params[1:]))
    P = _round_up(max_dim, LANE)

    w0 = jnp.zeros((F, P), compute_dtype)
    w0 = w0.at[:, :params[0][0].shape[1]].set(params[0][0].astype(compute_dtype))

    w_rest = jnp.zeros((L - 1, P, P), compute_dtype)
    b_packed = jnp.zeros((L, P), jnp.float32)
    b_packed = b_packed.at[0, :params[0][1].shape[0]].set(params[0][1])
    for i, (w, b) in enumerate(params[1:], start=1):
        fi, fo = w.shape
        w_rest = w_rest.at[i - 1, :fi, :fo].set(w.astype(compute_dtype))
        b_packed = b_packed.at[i, :fo].set(b)

    # Fold the action-lane mask into the last layer's bias: padded output
    # columns of W are zero, so those lanes become exactly -1e30 -> exp() == 0.
    b_packed = b_packed.at[L - 1, action_space_size:].set(NEG_INF)
    return w0, w_rest, b_packed


def actor_small_reference(x, params, compute_dtype=None):
    """Pure-JAX reference. compute_dtype=bf16 matches the kernel's matmul
    precision; compute_dtype=None is the exact f32 PyTorch-equivalent path."""
    h = x
    for i, (w, b) in enumerate(params):
        if compute_dtype is None:
            y = h @ w + b
        else:
            y = jnp.dot(h.astype(compute_dtype), w.astype(compute_dtype),
                        preferred_element_type=jnp.float32) + b
        h = jnp.maximum(y, 0.0) if i < len(params) - 1 else y
    return jax.nn.softmax(h, axis=-1)


if __name__ == "__main__":
    state_input_size = 16
    action_space_size = 6
    hidden_size = 32
    batch = 4

    key = jax.random.PRNGKey(0)
    key, kx = jax.random.split(key)
    x = jax.random.normal(kx, (batch, state_input_size), jnp.float32)

    params = init_params(key, state_input_size, action_space_size, hidden_size)
    w0_packed, w_rest_packed, b_packed = pack_params(
        params, action_space_size, compute_dtype=jnp.bfloat16)

    probs = actor_small_forward(x, w0_packed, w_rest_packed, b_packed,
                                action_space_size)
    probs = jax.block_until_ready(probs)
    assert probs.shape == (batch, action_space_size)

    # Apples-to-apples check: same bf16 matmul operands / f32 accumulation.
    ref_bf16 = actor_small_reference(x, params, compute_dtype=jnp.bfloat16)
    assert jnp.allclose(probs, ref_bf16, atol=2e-3, rtol=2e-3), "kernel != bf16 ref"

    # Loose sanity check against the exact f32 PyTorch-equivalent forward.
    ref_f32 = actor_small_reference(x, params)
    assert jnp.allclose(probs, ref_f32, atol=3e-2, rtol=3e-2), "kernel far from f32 ref"

    # Probabilities sum to 1 (exact divide in the kernel -> tight tolerance).
    assert jnp.allclose(jnp.sum(probs, axis=-1), 1.0, atol=1e-4)

    print("KERNEL_OK")
</pallas_src>

<mosaic_0001>
module attributes {stable_mosaic.version = 11 : i64} {
  func.func @actor_small_kernel(%arg0: i32, %arg1: memref<8x16xf32, #tpu.memory_space<vmem>>, %arg2: memref<16x128xbf16, #tpu.memory_space<vmem>>, %arg3: memref<4x128x128xbf16, #tpu.memory_space<vmem>>, %arg4: memref<5x128xf32, #tpu.memory_space<vmem>>, %arg5: memref<8x8xf32, #tpu.memory_space<vmem>>) attributes {dimension_semantics = [#tpu.dimension_semantics<parallel>], iteration_bounds = array<i64: 1>, scalar_prefetch = 0 : i64, scratch_operands = 0 : i64, tpu.core_type = #tpu.core_type<tc>, window_params = [{transform_indices = @transform_0, window_bounds = array<i64: 8, 16>}, {pipeline_mode = #tpu.pipeline_mode<synchronous>, transform_indices = @transform_1, window_bounds = array<i64: 16, 128>}, {pipeline_mode = #tpu.pipeline_mode<synchronous>, transform_indices = @transform_2, window_bounds = array<i64: 4, 128, 128>}, {pipeline_mode = #tpu.pipeline_mode<synchronous>, transform_indices = @transform_3, window_bounds = array<i64: 5, 128>}, {transform_indices = @transform_4, window_bounds = array<i64: 8, 8>}]} {
    %c0 = arith.constant 0 : index
    %c0_0 = arith.constant 0 : index
    %0 = vector.load %arg4[%c0, %c0_0] : memref<5x128xf32, #tpu.memory_space<vmem>>, vector<5x128xf32>
    %c0_1 = arith.constant 0 : index
    %c0_2 = arith.constant 0 : index
    %1 = vector.load %arg1[%c0_1, %c0_2] : memref<8x16xf32, #tpu.memory_space<vmem>>, vector<8x16xf32>
    %2 = arith.truncf %1 : vector<8x16xf32> to vector<8x16xbf16>
    %c0_3 = arith.constant 0 : index
    %c0_4 = arith.constant 0 : index
    %3 = vector.load %arg2[%c0_3, %c0_4] : memref<16x128xbf16, #tpu.memory_space<vmem>>, vector<16x128xbf16>
    %cst = arith.constant dense<0.000000e+00> : vector<8x128xf32>
    %4 = tpu.matmul %2, %3, %cst {dimension_numbers = #tpu.dot_dimension_numbers<[1], [0], [0], [1], [0, 0, 1, 1], [], []>} : vector<8x16xbf16>, vector<16x128xbf16>, vector<8x128xf32> -> vector<8x128xf32>
    %5 = vector.extract_strided_slice %0 {offsets = [0, 0], sizes = [1, 128], strides = [1, 1]} : vector<5x128xf32> to vector<1x128xf32>
    %6 = vector.broadcast %5 : vector<1x128xf32> to vector<8x128xf32>
    %7 = arith.addf %4, %6 : vector<8x128xf32>
    %cst_5 = arith.constant 0.000000e+00 : f32
    %8 = vector.broadcast %cst_5 : f32 to vector<8x128xf32>
    %9 = arith.maximumf %7, %8 : vector<8x128xf32>
    %10 = arith.truncf %9 : vector<8x128xf32> to vector<8x128xbf16>
    %c0_6 = arith.constant 0 : index
    %c0_7 = arith.constant 0 : index
    %c0_8 = arith.constant 0 : index
    %11 = vector.load %arg3[%c0_6, %c0_7, %c0_8] : memref<4x128x128xbf16, #tpu.memory_space<vmem>>, vector<1x128x128xbf16>
    %12 = vector.shape_cast %11 : vector<1x128x128xbf16> to vector<128x128xbf16>
    %cst_9 = arith.constant dense<0.000000e+00> : vector<8x128xf32>
    %13 = tpu.matmul %10, %12, %cst_9 {dimension_numbers = #tpu.dot_dimension_numbers<[1], [0], [0], [1], [0, 0, 1, 1], [], []>} : vector<8x128xbf16>, vector<128x128xbf16>, vector<8x128xf32> -> vector<8x128xf32>
    %14 = vector.extract_strided_slice %0 {offsets = [1, 0], sizes = [1, 128], strides = [1, 1]} : vector<5x128xf32> to vector<1x128xf32>
    %15 = vector.broadcast %14 : vector<1x128xf32> to vector<8x128xf32>
    %16 = arith.addf %13, %15 : vector<8x128xf32>
    %cst_10 = arith.constant 0.000000e+00 : f32
    %17 = vector.broadcast %cst_10 : f32 to vector<8x128xf32>
    %18 = arith.maximumf %16, %17 : vector<8x128xf32>
    %19 = arith.truncf %18 : vector<8x128xf32> to vector<8x128xbf16>
    %c1 = arith.constant 1 : index
    %c0_11 = arith.constant 0 : index
    %c0_12 = arith.constant 0 : index
    %20 = vector.load %arg3[%c1, %c0_11, %c0_12] : memref<4x128x128xbf16, #tpu.memory_space<vmem>>, vector<1x128x128xbf16>
    %21 = vector.shape_cast %20 : vector<1x128x128xbf16> to vector<128x128xbf16>
    %cst_13 = arith.constant dense<0.000000e+00> : vector<8x128xf32>
    %22 = tpu.matmul %19, %21, %cst_13 {dimension_numbers = #tpu.dot_dimension_numbers<[1], [0], [0], [1], [0, 0, 1, 1], [], []>} : vector<8x128xbf16>, vector<128x128xbf16>, vector<8x128xf32> -> vector<8x128xf32>
    %23 = vector.extract_strided_slice %0 {offsets = [2, 0], sizes = [1, 128], strides = [1, 1]} : vector<5x128xf32> to vector<1x128xf32>
    %24 = vector.broadcast %23 : vector<1x128xf32> to vector<8x128xf32>
    %25 = arith.addf %22, %24 : vector<8x128xf32>
    %cst_14 = arith.constant 0.000000e+00 : f32
    %26 = vector.broadcast %cst_14 : f32 to vector<8x128xf32>
    %27 = arith.maximumf %25, %26 : vector<8x128xf32>
    %28 = arith.truncf %27 : vector<8x128xf32> to vector<8x128xbf16>
    %c2 = arith.constant 2 : index
    %c0_15 = arith.constant 0 : index
    %c0_16 = arith.constant 0 : index
    %29 = vector.load %arg3[%c2, %c0_15, %c0_16] : memref<4x128x128xbf16, #tpu.memory_space<vmem>>, vector<1x128x128xbf16>
    %30 = vector.shape_cast %29 : vector<1x128x128xbf16> to vector<128x128xbf16>
    %cst_17 = arith.constant dense<0.000000e+00> : vector<8x128xf32>
    %31 = tpu.matmul %28, %30, %cst_17 {dimension_numbers = #tpu.dot_dimension_numbers<[1], [0], [0], [1], [0, 0, 1, 1], [], []>} : vector<8x128xbf16>, vector<128x128xbf16>, vector<8x128xf32> -> vector<8x128xf32>
    %32 = vector.extract_strided_slice %0 {offsets = [3, 0], sizes = [1, 128], strides = [1, 1]} : vector<5x128xf32> to vector<1x128xf32>
    %33 = vector.broadcast %32 : vector<1x128xf32> to vector<8x128xf32>
    %34 = arith.addf %31, %33 : vector<8x128xf32>
    %cst_18 = arith.constant 0.000000e+00 : f32
    %35 = vector.broadcast %cst_18 : f32 to vector<8x128xf32>
    %36 = arith.maximumf %34, %35 : vector<8x128xf32>
    %37 = arith.truncf %36 : vector<8x128xf32> to vector<8x128xbf16>
    %c3 = arith.constant 3 : index
    %c0_19 = arith.constant 0 : index
    %c0_20 = arith.constant 0 : index
    %38 = vector.load %arg3[%c3, %c0_19, %c0_20] : memref<4x128x128xbf16, #tpu.memory_space<vmem>>, vector<1x128x128xbf16>
    %39 = vector.shape_cast %38 : vector<1x128x128xbf16> to vector<128x128xbf16>
    %cst_21 = arith.constant dense<0.000000e+00> : vector<8x128xf32>
    %40 = tpu.matmul %37, %39, %cst_21 {dimension_numbers = #tpu.dot_dimension_numbers<[1], [0], [0], [1], [0, 0, 1, 1], [], []>} : vector<8x128xbf16>, vector<128x128xbf16>, vector<8x128xf32> -> vector<8x128xf32>
    %41 = vector.extract_strided_slice %0 {offsets = [4, 0], sizes = [1, 128], strides = [1, 1]} : vector<5x128xf32> to vector<1x128xf32>
    %42 = vector.broadcast %41 : vector<1x128xf32> to vector<8x128xf32>
    %43 = arith.addf %40, %42 : vector<8x128xf32>
    %cst_22 = arith.constant dense<0xFF800000> : vector<8xf32>
    %44 = vector.multi_reduction <maximumf>, %43, %cst_22 [1] : vector<8x128xf32> to vector<8xf32>
    %45 = vector.shape_cast %44 : vector<8xf32> to vector<8x1xf32>
    %46 = vector.broadcast %45 : vector<8x1xf32> to vector<8x128xf32>
    %47 = arith.subf %43, %46 : vector<8x128xf32>
    %48 = math.exp %47 : vector<8x128xf32>
    %cst_23 = arith.constant dense<0.000000e+00> : vector<8xf32>
    %49 = vector.multi_reduction <add>, %48, %cst_23 [1] : vector<8x128xf32> to vector<8xf32>
    %50 = vector.shape_cast %49 : vector<8xf32> to vector<8x1xf32>
    %51 = vector.broadcast %50 : vector<8x1xf32> to vector<8x128xf32>
    %52 = arith.divf %48, %51 : vector<8x128xf32>
    %53 = vector.extract_strided_slice %52 {offsets = [0, 0], sizes = [8, 8], strides = [1, 1]} : vector<8x128xf32> to vector<8x8xf32>
    %c0_24 = arith.constant 0 : index
    %c0_25 = arith.constant 0 : index
    %54 = vector.load %arg5[%c0_24, %c0_25] : memref<8x8xf32, #tpu.memory_space<vmem>>, vector<8x8xf32>
    tpu.vector_store %arg5[%c0_24, %c0_25], %53 {strides = array<i32>} : memref<8x8xf32, #tpu.memory_space<vmem>>, vector<8x8xf32>,
    return
  }
  func.func @transform_0(%arg0: i32) -> (i32, i32) {
    %c0_i32 = arith.constant 0 : i32
    %c0_i32_0 = arith.constant 0 : i32
    return %arg0, %c0_i32 : i32, i32
  }
  func.func @transform_1(%arg0: i32) -> (i32, i32) {
    %c0_i32 = arith.constant 0 : i32
    %c0_i32_0 = arith.constant 0 : i32
    %c0_i32_1 = arith.constant 0 : i32
    return %c0_i32, %c0_i32_0 : i32, i32
  }
  func.func @transform_2(%arg0: i32) -> (i32, i32, i32) {
    %c0_i32 = arith.constant 0 : i32
    %c0_i32_0 = arith.constant 0 : i32
    %c0_i32_1 = arith.constant 0 : i32
    %c0_i32_2 = arith.constant 0 : i32
    return %c0_i32, %c0_i32_0, %c0_i32_1 : i32, i32, i32
  }
  func.func @transform_3(%arg0: i32) -> (i32, i32) {
    %c0_i32 = arith.constant 0 : i32
    %c0_i32_0 = arith.constant 0 : i32
    %c0_i32_1 = arith.constant 0 : i32
    return %c0_i32, %c0_i32_0 : i32, i32
  }
  func.func @transform_4(%arg0: i32) -> (i32, i32) {
    %c0_i32 = arith.constant 0 : i32
    %c0_i32_0 = arith.constant 0 : i32
    return %arg0, %c0_i32 : i32, i32
  }
}

</mosaic_0001>

<bundles_post_ra>
// kernel: tpu_custom_call.1
= control target key start
LH: loop header
LB: loop body
LE: loop exit
PB: predicated region body
PF: predicated region fallthrough
CT: control target
= control target key end

     0   :  { %9 = vsyncpa [#allocation3], 0  ;;  %s1031_s0 = inlined_call_operand.hbm [shape: f32[8,16], index: 0, kind: input, shape index: {}]   ;;  %s1032_s1 = inlined_call_operand.hbm [shape: bf16[16,128], index: 1, kind: input, shape index: {}]   ;;  %s1033_s2 = inlined_call_operand.hbm [shape: bf16[4,128,128], index: 2, kind: input, shape index: {}]   ;;  %s1034_s3 = inlined_call_operand.vmem [shape: f32[5,128], index: 3, kind: input, shape index: {}]   ;;  %s1035_s4 = inlined_call_operand.hbm [shape: f32[8,8], index: 4, kind: output, shape index: {}]  }
   0x1   :  { %10 = vsyncpa [#allocation6], 0 }
   0x2   :  { %11 = vsyncpa [#allocation4], 0  ;;  %s884_s15 = smov [#allocation5]   ;;  %s790_s19 = scalar_lea.hbm %s1032_s1, 128 }
   0x3   :  { %s27_s16 = sshll.u32 %s884_s15, 4  ;;  %p791_p0 = scmp.ne.s32.totalorder %s1032_s1, %s790_s19  ;;  %s28_s16 = int_to_ptr.vmem [resolvable:$true] %s27_s16 }
   0x4   :  { %p794_p1 = scmp.lt.u32.totalorder %s790_s19, %s1032_s1 }
   0x6   :  { %p796_p2 = pnand %p794_p1, %p791_p0 }
   0x8   :  { %799 = shalt.err (!%p796_p2)
}
   0x9   :  { %s800_s24 = scalar_lea.vmem %s28_s16, 128  ;;  %p805_p4 = scmp.lt.s32.totalorder %s28_s16, %s28_s16 }
   0xa   :  { %p801_p3 = scmp.ne.s32.totalorder %s28_s16, %s800_s24  ;;  %p806_p5 = scmp.lt.s32.totalorder %s800_s24, %s800_s24 }
   0xc   :  { %p807_p6 = por %p806_p5, %p805_p4 }
   0xe   :  { %p808_p7 = pnand %p807_p6, %p801_p3 }
  0x10   :  { %811 = shalt.err (!%p808_p7)
}
  0x11   :  { %s885_s25 = smov 64   ;;  %s886_s26 = smov 4  }
  0x12   :  { %33 = dma.hbm_to_vmem [thread:$0]  %s1032_s1, 128, %s28_s16, [#allocation6], %s885_s25, %s885_s25, %s886_s26  }
  0x13   :  { %s887_s29 = smov [#allocation2]   ;;  %s888_s5 = smov [#allocation7]  }
  0x14   :  { %s18_s30 = sshll.u32 %s887_s29, 4  ;;  %s39_s6 = sshll.u32 %s888_s5, 4  ;;  %s19_s30 = int_to_ptr.vmem [resolvable:$true] %s18_s30  ;;  %s40_s6 = int_to_ptr.vmem [resolvable:$true] %s39_s6 }
  0x15   :  { %s812_s9 = scalar_lea.hbm %s1031_s0, 128 }
  0x16   :  { %p813_p8 = scmp.ne.s32.totalorder %s1031_s0, %s812_s9  ;;  %p816_p9 = scmp.lt.u32.totalorder %s812_s9, %s1031_s0 }
  0x18   :  { %p818_p10 = pnand %p816_p9, %p813_p8 }
  0x1a   :  { %821 = shalt.err (!%p818_p10)
}
  0x1b   :  { %s822_s1 = scalar_lea.vmem %s19_s30, 128  ;;  %p827_p12 = scmp.lt.s32.totalorder %s19_s30, %s19_s30 }
  0x1c   :  { %p823_p11 = scmp.ne.s32.totalorder %s19_s30, %s822_s1  ;;  %p828_p13 = scmp.lt.s32.totalorder %s822_s1, %s822_s1 }
  0x1e   :  { %p829_p0 = por %p828_p13, %p827_p12 }
  0x20   :  { %p830_p1 = pnand %p829_p0, %p823_p11 }
  0x22   :  { %833 = shalt.err (!%p830_p1)
}
  0x23   :  { %21 = dma.hbm_to_vmem [thread:$0]  %s1031_s0, 128, %s19_s30, [#allocation3]  }
  0x24   :  { %s834_s18 = scalar_lea.hbm %s1033_s2, 4096 }
  0x25   :  { %p835_p2 = scmp.ne.s32.totalorder %s1033_s2, %s834_s18  ;;  %p838_p3 = scmp.lt.u32.totalorder %s834_s18, %s1033_s2 }
  0x27   :  { %p840_p4 = pnand %p838_p3, %p835_p2 }
  0x29   :  { %843 = shalt.err (!%p840_p4)
}
  0x2a   :  { %s844_s23 = scalar_lea.vmem %s40_s6, 4096  ;;  %p849_p6 = scmp.lt.s32.totalorder %s40_s6, %s40_s6 }
  0x2b   :  { %p845_p5 = scmp.ne.s32.totalorder %s40_s6, %s844_s23  ;;  %p850_p7 = scmp.lt.s32.totalorder %s844_s23, %s844_s23 }
  0x2d   :  { %p851_p8 = por %p850_p7, %p849_p6 }
  0x2f   :  { %p852_p9 = pnand %p851_p8, %p845_p5 }
  0x31   :  { %855 = shalt.err (!%p852_p9)
}
  0x32   :  { %45 = dma.hbm_to_vmem [thread:$0]  %s1033_s2, 4096, %s40_s6, [#allocation6], %s885_s25, %s885_s25, %s886_s26  }
  0x33   :  { %878 = dma.done.wait [#allocation3], 128  }
  0x34   :  { %879 = vsyncadd [#allocation3], 4294967168 }
  0x35   :  { %880 = dma.done.wait [#allocation6], 4224  }
  0x36   :  { %881 = vsyncadd [#allocation6], 4294963072  ;;  %v889_v0 = vmov 0.0   ;;  %vm890_vm0 = vmmov 0   ;;  %v753_v1 = vld [vmem:[#allocation5] sm:$0xff]   ;;  %v59_v2 = vld [vmem:[#allocation2] sm:$0xff]  ;;  %v63_v18 = vlaneseq }
  0x37   :  { %659 = vmatprep.subr.bf16.mxu0 %v889_v0  ;;  %661 = vmatprep.mubr.msk.bf16.mxu0 %vm890_vm0, %v889_v0  ;;  %v60_v3 = vpack.c.bf16 %v59_v2, %v59_v2  ;;  %vm73_vm1 = vcmask 130048   ;;  %v754_v4 = vld [vmem:[#allocation7] sm:$0xff]   ;;  %v755_v5 = vld [vmem:[#allocation7 + $0x8] sm:$0xff]   ;;  %v756_v6 = vld [vmem:[#allocation7 + $0x10] sm:$0xff]   ;;  %vm569_vm2 = vcmask 64512  }
  0x38   :  { %665 = vmatprep.subr.bf16.mxu1 %v889_v0  ;;  %681 = vmatprep.mubr.msk.bf16.mxu1 %vm890_vm0, %v889_v0  ;;  %v757_v7 = vld [vmem:[#allocation7 + $0x18] sm:$0xff]   ;;  %v758_v8 = vld [vmem:[#allocation7 + $0x20] sm:$0xff]   ;;  %v759_v9 = vld [vmem:[#allocation7 + $0x28] sm:$0xff]   ;;  %v982_v19 = vshrl.u32 %v63_v18, 7 }
  0x39   :  { %660 = vmatpush3.bf16.msra.mxu0 %v753_v1  ;;  %666 = vmatpush3.bf16.msra.mxu1 %v754_v4  ;;  %v760_v10 = vld [vmem:[#allocation7 + $0x30] sm:$0xff]   ;;  %v761_v11 = vld [vmem:[#allocation7 + $0x38] sm:$0xff]   ;;  %v762_v12 = vld [vmem:[#allocation7 + $0x40] sm:$0xff]  }
  0x3a   :  { %685 = vmatprep.subr.bf16.mxu0 %v889_v0  ;;  %667 = vmatprep.subr.bf16.mxu1 %v889_v0  ;;  %v763_v13 = vld [vmem:[#allocation7 + $0x48] sm:$0xff]   ;;  %v764_v14 = vld [vmem:[#allocation7 + $0x50] sm:$0xff]   ;;  %v765_v15 = vld [vmem:[#allocation7 + $0x58] sm:$0xff]   ;;  %v65_v20 = vsub.s32 0, %v982_v19  ;;  %v137_v38 = vsub.s32 1, %v982_v19  ;;  %v248_v55 = vsub.s32 2, %v982_v19 }
  0x3b   :  { %v766_v16 = vld [vmem:[#allocation7 + $0x60] sm:$0xff]   ;;  %v767_v17 = vld [vmem:[#allocation7 + $0x68] sm:$0xff]   ;;  %v988_v21 = vld [vmem:[%s1034_s3] sm:$0x1f]  ;;  %s891_s3 = smov [#allocation8]  }
  0x3c   :  { %662 = vmatmul.mubr.msk.bf16.vlgmr.msra.gmra.mrb[0].mxu0 %vm73_vm1, %v60_v3  ;;  %v66_v22 = vrot.slane %v988_v21, %v65_v20  ;;  %v768_v30 = vld [vmem:[#allocation7 + $0x70] sm:$0xff]   ;;  %v769_v31 = vld [vmem:[#allocation7 + $0x78] sm:$0xff]   ;;  %v770_v32 = vld [vmem:[#allocation7 + $0x80] sm:$0xff]   ;;  %v138_v39 = vrot.slane %v988_v21, %v137_v38  ;;  %v249_v56 = vrot.slane %v988_v21, %v248_v55  ;;  %v359_v3 = vsub.s32 3, %v982_v19  ;;  %s577_s26 = sshll.u32 %s891_s3, 4  ;;  %s578_s26 = int_to_ptr.vmem [resolvable:$true] %s577_s26 }
  0x3d   :  { %701 = vmatprep.mubr.msk.bf16.mxu0 %vm890_vm0, %v889_v0  ;;  %668 = vmatpush3.bf16.msra.mxu1 %v755_v5  ;;  %v771_v33 = vld [vmem:[#allocation7 + $0x88] sm:$0xff]   ;;  %v772_v34 = vld [vmem:[#allocation7 + $0x90] sm:$0xff]   ;;  %v773_v35 = vld [vmem:[#allocation7 + $0x98] sm:$0xff]   ;;  %s856_s27 = scalar_lea.vmem %s578_s26, 128  ;;  %p861_p11 = scmp.lt.s32.totalorder %s578_s26, %s578_s26 }
  0x3e   :  { %669 = vmatprep.subr.bf16.mxu1 %v889_v0  ;;  %686 = vmatpush3.bf16.msra.mxu0 %v762_v12  ;;  %v774_v36 = vld [vmem:[#allocation7 + $0xa0] sm:$0xff]   ;;  %v775_v37 = vld [vmem:[#allocation7 + $0xa8] sm:$0xff]   ;;  %v776_v47 = vld [vmem:[#allocation7 + $0xb0] sm:$0xff]   ;;  %v360_v4 = vrot.slane %v988_v21, %v359_v3  ;;  %v470_v12 = vsub.s32 4, %v982_v19  ;;  %p857_p10 = scmp.ne.s32.totalorder %s578_s26, %s856_s27  ;;  %p862_p12 = scmp.lt.s32.totalorder %s856_s27, %s856_s27 }
  0x3f   :  { %687 = vmatprep.subr.bf16.mxu0 %v889_v0  ;;  %v777_v48 = vld [vmem:[#allocation7 + $0xb8] sm:$0xff]   ;;  %v778_v49 = vld [vmem:[#allocation7 + $0xc0] sm:$0xff]   ;;  %v779_v50 = vld [vmem:[#allocation7 + $0xc8] sm:$0xff]  }
  0x40   :  { %v780_v51 = vld [vmem:[#allocation7 + $0xd0] sm:$0xff]   ;;  %v781_v52 = vld [vmem:[#allocation7 + $0xd8] sm:$0xff]   ;;  %v782_v53 = vld [vmem:[#allocation7 + $0xe0] sm:$0xff]   ;;  %p863_p13 = por %p862_p12, %p861_p11 }
  0x41   :  { %670 = vmatpush3.bf16.msra.mxu1 %v756_v6  ;;  %v783_v54 = vld [vmem:[#allocation7 + $0xe8] sm:$0xff]   ;;  %v784_v1 = vld [vmem:[#allocation7 + $0xf0] sm:$0xff]   ;;  %v785_v2 = vld [vmem:[#allocation7 + $0xf8] sm:$0xff]  }
  0x42   :  { %671 = vmatprep.subr.bf16.mxu1 %v889_v0  ;;  %688 = vmatpush3.bf16.msra.mxu0 %v763_v13  ;;  %v471_v13 = vrot.slane %v988_v21, %v470_v12  ;;  %p864_p0 = pnand %p863_p13, %p857_p10 }
  0x43   :  { %689 = vmatprep.subr.bf16.mxu0 %v889_v0 }
  0x45   :  { %672 = vmatpush3.bf16.msra.mxu1 %v757_v7 }
  0x46   :  { %673 = vmatprep.subr.bf16.mxu1 %v889_v0  ;;  %690 = vmatpush3.bf16.msra.mxu0 %v764_v14 }
  0x47   :  { %691 = vmatprep.subr.bf16.mxu0 %v889_v0 }
  0x49   :  { %674 = vmatpush3.bf16.msra.mxu1 %v758_v8 }
  0x4a   :  { %675 = vmatprep.subr.bf16.mxu1 %v889_v0  ;;  %692 = vmatpush3.bf16.msra.mxu0 %v765_v15 }
  0x4b   :  { %693 = vmatprep.subr.bf16.mxu0 %v889_v0 }
  0x4d   :  { %676 = vmatpush3.bf16.msra.mxu1 %v759_v9 }
  0x4e   :  { %677 = vmatprep.subr.bf16.mxu1 %v889_v0  ;;  %694 = vmatpush3.bf16.msra.mxu0 %v766_v16 }
  0x4f   :  { %695 = vmatprep.subr.bf16.mxu0 %v889_v0 }
  0x51   :  { %678 = vmatpush3.bf16.msra.mxu1 %v760_v10 }
  0x52   :  { %679 = vmatprep.subr.bf16.mxu1 %v889_v0  ;;  %696 = vmatpush3.bf16.msra.mxu0 %v767_v17 }
  0x53   :  { %697 = vmatprep.subr.bf16.mxu0 %v889_v0 }
  0x55   :  { %680 = vmatpush3.bf16.msra.mxu1 %v761_v11 }
  0x56   :  { %705 = vmatprep.subr.bf16.mxu1 %v889_v0  ;;  %698 = vmatpush3.bf16.msra.mxu0 %v768_v30 }
  0x57   :  { %699 = vmatprep.subr.bf16.mxu0 %v889_v0 }
  0x5a   :  { %700 = vmatpush3.bf16.msra.mxu0 %v769_v31 }
  0x5b   :  { %725 = vmatprep.subr.bf16.mxu0 %v889_v0 }
 0x10f   :  { %v111_v23 = vpop.f32.mrb[0].mxu0 }
 0x110   :  { %v112_v24 = vadd.f32 %v111_v23, %v66_v22  ;;  %v663_v25 = vpop.f32.mrb[1].mxu0 }
 0x111   :  { %v114_v26 = vpop.f32.mrb[2].mxu0 }
 0x112   :  { %v117_v27 = vmax.f32 %v112_v24, 0.0  ;;  %v664_v28 = vpop.f32.mrb[3].mxu0 }
 0x114   :  { %v118_v29 = vpack.c.bf16 %v117_v27, %v117_v27 }
 0x116   :  { %682 = vmatmul.mubr.bf16.vlgmr.msra.gmra.mrb[0].mxu1 %v118_v29 }
 0x117   :  { %721 = vmatprep.mubr.msk.bf16.mxu1 %vm890_vm0, %v889_v0  ;;  %706 = vmatpush3.bf16.msra.mxu1 %v770_v32 }
 0x118   :  { %707 = vmatprep.subr.bf16.mxu1 %v889_v0 }
 0x11b   :  { %708 = vmatpush3.bf16.msra.mxu1 %v771_v33 }
 0x11c   :  { %709 = vmatprep.subr.bf16.mxu1 %v889_v0 }
 0x11f   :  { %710 = vmatpush3.bf16.msra.mxu1 %v772_v34 }
 0x120   :  { %711 = vmatprep.subr.bf16.mxu1 %v889_v0 }
 0x123   :  { %712 = vmatpush3.bf16.msra.mxu1 %v773_v35 }
 0x124   :  { %713 = vmatprep.subr.bf16.mxu1 %v889_v0 }
 0x127   :  { %714 = vmatpush3.bf16.msra.mxu1 %v774_v36 }
 0x128   :  { %715 = vmatprep.subr.bf16.mxu1 %v889_v0 }
 0x12b   :  { %716 = vmatpush3.bf16.msra.mxu1 %v775_v37 }
 0x12c   :  { %717 = vmatprep.subr.bf16.mxu1 %v889_v0 }
 0x12f   :  { %718 = vmatpush3.bf16.msra.mxu1 %v776_v47 }
 0x130   :  { %719 = vmatprep.subr.bf16.mxu1 %v889_v0 }
 0x133   :  { %720 = vmatpush3.bf16.msra.mxu1 %v777_v48 }
 0x1e9   :  { %v221_v40 = vpop.f32.mrb[0].mxu1 }
 0x1ea   :  { %v222_v41 = vadd.f32 %v221_v40, %v138_v39  ;;  %v683_v42 = vpop.f32.mrb[1].mxu1 }
 0x1eb   :  { %v224_v43 = vpop.f32.mrb[2].mxu1 }
 0x1ec   :  { %v227_v44 = vmax.f32 %v222_v41, 0.0  ;;  %v684_v45 = vpop.f32.mrb[3].mxu1 }
 0x1ee   :  { %v228_v46 = vpack.c.bf16 %v227_v44, %v227_v44 }
 0x1f0   :  { %702 = vmatmul.mubr.bf16.vlgmr.msra.gmra.mrb[4].mxu0 %v228_v46 }
 0x1f1   :  { %741 = vmatprep.mubr.msk.bf16.mxu0 %vm890_vm0, %v889_v0  ;;  %726 = vmatpush3.bf16.msra.mxu0 %v778_v49 }
 0x1f2   :  { %727 = vmatprep.subr.bf16.mxu0 %v889_v0 }
 0x1f5   :  { %728 = vmatpush3.bf16.msra.mxu0 %v779_v50 }
 0x1f6   :  { %729 = vmatprep.subr.bf16.mxu0 %v889_v0 }
 0x1f9   :  { %730 = vmatpush3.bf16.msra.mxu0 %v780_v51 }
 0x1fa   :  { %731 = vmatprep.subr.bf16.mxu0 %v889_v0 }
 0x1fd   :  { %732 = vmatpush3.bf16.msra.mxu0 %v781_v52 }
 0x1fe   :  { %733 = vmatprep.subr.bf16.mxu0 %v889_v0 }
 0x201   :  { %734 = vmatpush3.bf16.msra.mxu0 %v782_v53 }
 0x202   :  { %735 = vmatprep.subr.bf16.mxu0 %v889_v0 }
 0x205   :  { %736 = vmatpush3.bf16.msra.mxu0 %v783_v54 }
 0x206   :  { %737 = vmatprep.subr.bf16.mxu0 %v889_v0 }
 0x209   :  { %738 = vmatpush3.bf16.msra.mxu0 %v784_v1 }
 0x20a   :  { %739 = vmatprep.subr.bf16.mxu0 %v889_v0 }
 0x20d   :  { %740 = vmatpush3.bf16.msra.mxu0 %v785_v2 }
 0x2c3   :  { %v332_v57 = vpop.f32.mrb[4].mxu0 }
 0x2c4   :  { %v333_v58 = vadd.f32 %v332_v57, %v249_v56  ;;  %v703_v59 = vpop.f32.mrb[5].mxu0 }
 0x2c5   :  { %v335_v60 = vpop.f32.mrb[6].mxu0 }
 0x2c6   :  { %v338_v61 = vmax.f32 %v333_v58, 0.0  ;;  %v704_v62 = vpop.f32.mrb[7].mxu0 }
 0x2c8   :  { %v339_v63 = vpack.c.bf16 %v338_v61, %v338_v61 }
 0x2ca   :  { %722 = vmatmul.mubr.bf16.vlgmr.msra.gmra.mrb[4].mxu1 %v339_v63 }
 0x39d   :  { %v443_v5 = vpop.f32.mrb[4].mxu1 }
 0x39e   :  { %v444_v6 = vadd.f32 %v443_v5, %v360_v4  ;;  %v723_v7 = vpop.f32.mrb[5].mxu1 }
 0x39f   :  { %v446_v8 = vpop.f32.mrb[6].mxu1 }
 0x3a0   :  { %v449_v9 = vmax.f32 %v444_v6, 0.0  ;;  %v724_v10 = vpop.f32.mrb[7].mxu1 }
 0x3a2   :  { %v450_v11 = vpack.c.bf16 %v449_v9, %v449_v9 }
 0x3a4   :  { %742 = vmatmul.mubr.bf16.vlgmr.msra.gmra.mrb[8].mxu0 %v450_v11 }
 0x477   :  { %v554_v14 = vpop.f32.mrb[8].mxu0 }
 0x478   :  { %v555_v0 = vadd.f32 %v554_v14, %v471_v13  ;;  %v743_v15 = vpop.f32.mrb[9].mxu0 }
 0x479   :  { %v557_v16 = vpop.f32.mrb[10].mxu0 }
 0x47a   :  { %560 = vmax.xlane.f32.xlu0 %v555_v0  ;;  %v744_v17 = vpop.f32.mrb[11].mxu0 }
 0x507   :  { %v561_v18 = vpop.xlane.xlu0 %560 }
 0x508   :  { %v562_v20 = vsub.f32 %v555_v0, %v561_v18 }
 0x50a   :  { %v563_v22 = vmul.f32 1.442695, %v562_v20 }
 0x50c   :  { %786 = vpow2.f32 %v563_v22 }
 0x516   :  { %v787_v23 = vpop.eup %786 }
 0x517   :  { %565 = vadd.xlane.f32.xlu0 %v787_v23 }
 0x5a4   :  { %v566_v24 = vpop.xlane.xlu0 %565 }
 0x5a5   :  { %788 = vrcp.f32 %v566_v24 }
 0x5af   :  { %v789_v25 = vpop.eup %788 }
 0x5b0   :  { %v568_v19 = vmul.f32 %v789_v25, %v787_v23 }
 0x5b2   :  { %570 = vst.msk [vmem:[#allocation8] sm:$0xff] %vm569_vm2, %v568_v19 }
 0x5b3   :  { %867 = shalt.err (!%p864_p0)
}
 0x5b4   :  { %s868_s30 = scalar_lea.hbm %s1035_s4, 128 }
 0x5b5   :  { %p869_p1 = scmp.ne.s32.totalorder %s1035_s4, %s868_s30  ;;  %p872_p2 = scmp.lt.u32.totalorder %s868_s30, %s1035_s4 }
 0x5b7   :  { %p874_p3 = pnand %p872_p2, %p869_p1 }
 0x5b9   :  { %877 = shalt.err (!%p874_p3)
}
 0x5ba   :  { %580 = dma.vmem_to_hbm [thread:$0]  %s578_s26, 128, %s1035_s4, [#allocation4]  }
 0x5bb   :  { %882 = dma.done.wait [#allocation4], 128  }
 0x5bc   :  { %883 = vsyncadd [#allocation4], 4294967168 }
 0x5bd   :  { %584 = vsyncpa [#allocation3], 1 }
 0x5be   :  { %585 = vsyncpa [#allocation6], 1 }
 0x5bf   :  { %586 = vsyncpa [#allocation4], 1 }

</bundles_post_ra>
